<compile_context>
chip_gen: v5e
topology: v5e:2x2
jax: 0.10.0
libtpu: 0.0.40
codegen_flags: <defaults>
</compile_context>

<pallas_src>
import functools

import jax
import jax.numpy as jnp
import numpy as np
from jax.experimental import pallas as pl
from jax.experimental.pallas import tpu as pltpu


# ----------------------------------------------------------------------------
# Shared closed-form dynamics (works on any broadcast-compatible array shapes).
# ----------------------------------------------------------------------------
def _dynamics(t1, t2, t3, p1, p2, p3, *, m1, m2, m3, l1, l2, l3, g):
    s1, c1 = jnp.sin(t1), jnp.cos(t1)
    s2, c2 = jnp.sin(t2), jnp.cos(t2)
    s3, c3 = jnp.sin(t3), jnp.cos(t3)

    # cos / sin of angle differences without extra transcendentals.
    c12 = c1 * c2 + s1 * s2
    c13 = c1 * c3 + s1 * s3
    c23 = c2 * c3 + s2 * s3
    s12 = s1 * c2 - c1 * s2
    s13 = s1 * c3 - c1 * s3
    s23 = s2 * c3 - c2 * s3

    # Mass-matrix coefficients (compile-time constants) and theta-dependent entries.
    a11 = (m1 + m2 + m3) * l1 * l1
    a22 = (m2 + m3) * l2 * l2
    a33 = m3 * l3 * l3
    a12 = (m2 + m3) * l1 * l2
    a13 = m3 * l1 * l3
    a23 = m3 * l2 * l3

    m12 = a12 * c12
    m13 = a13 * c13
    m23 = a23 * c23

    # 3x3 symmetric inverse via adjugate / determinant (vectorizes across lanes).
    det = (a11 * (a22 * a33 - m23 * m23)
           - m12 * (m12 * a33 - m23 * m13)
           + m13 * (m12 * m23 - a22 * m13))
    b11 = a22 * a33 - m23 * m23
    b12 = m13 * m23 - m12 * a33
    b13 = m12 * m23 - m13 * a22
    b22 = a11 * a33 - m13 * m13
    b23 = m12 * m13 - a11 * m23
    b33 = a11 * a22 - m12 * m12
    inv_det = 1.0 / det  # exact divide: adjugate inverse is sensitive near-aligned configs

    # dq = dH/dp = M^{-1} p
    dth1 = (b11 * p1 + b12 * p2 + b13 * p3) * inv_det
    dth2 = (b12 * p1 + b22 * p2 + b23 * p3) * inv_det
    dth3 = (b13 * p1 + b23 * p2 + b33 * p3) * inv_det

    # dp = -dH/dtheta = 0.5 * dq^T (dM/dth_i) dq - dU/dth_i
    g1 = g * (m1 + m2 + m3) * l1
    g2 = g * (m2 + m3) * l2
    g3 = g * m3 * l3

    dp1 = -a12 * s12 * dth1 * dth2 - a13 * s13 * dth1 * dth3 - g1 * s1
    dp2 = a12 * s12 * dth1 * dth2 - a23 * s23 * dth2 * dth3 - g2 * s2
    dp3 = a13 * s13 * dth1 * dth3 + a23 * s23 * dth2 * dth3 - g3 * s3

    return dth1, dth2, dth3, dp1, dp2, dp3


# ----------------------------------------------------------------------------
# Single-state kernel: y is (1, 6) AoS [theta1..3, p1..3]; one fused store.
# ----------------------------------------------------------------------------
def _pend3_kernel_single(y_ref, o_ref, *, m1, m2, m3, l1, l2, l3, g):
    t1 = y_ref[:, 0:1]
    t2 = y_ref[:, 1:2]
    t3 = y_ref[:, 2:3]
    p1 = y_ref[:, 3:4]
    p2 = y_ref[:, 4:5]
    p3 = y_ref[:, 5:6]

    dth1, dth2, dth3, dp1, dp2, dp3 = _dynamics(
        t1, t2, t3, p1, p2, p3, m1=m1, m2=m2, m3=m3, l1=l1, l2=l2, l3=l3, g=g)

    # Build the whole (1, 6) row with selects and issue a single store
    # (instead of six 1-lane masked stores serializing on the vst slot).
    lane = jax.lax.broadcasted_iota(jnp.int32, (1, 6), dimension=1)
    out = jnp.broadcast_to(dth1, (1, 6))
    out = jnp.where(lane == 1, dth2, out)
    out = jnp.where(lane == 2, dth3, out)
    out = jnp.where(lane == 3, dp1, out)
    out = jnp.where(lane == 4, dp2, out)
    out = jnp.where(lane == 5, dp3, out)
    o_ref[...] = out


def pendelum3dof_forward(t, y, *, m1, m2, m3, l1, l2, l3, g):
    """Matches pendelum3dof.forward(t, y): y is (1, 6) [theta, p]; returns (1, 6) [dq, -dH/dtheta]."""
    del t  # unused, same as the PyTorch module
    y = jnp.asarray(y, jnp.float32)
    assert y.shape == (1, 6)
    kernel = functools.partial(
        _pend3_kernel_single,
        m1=float(m1), m2=float(m2), m3=float(m3),
        l1=float(l1), l2=float(l2), l3=float(l3), g=float(g),
    )
    # Gridless call: the whole (tiny) array lives in VMEM, no pipeline prologue.
    return pl.pallas_call(
        kernel,
        out_shape=jax.ShapeDtypeStruct((1, 6), jnp.float32),
        in_specs=[pl.BlockSpec(memory_space=pltpu.MemorySpace.VMEM)],
        out_specs=pl.BlockSpec(memory_space=pltpu.MemorySpace.VMEM),
    )(y)


# ----------------------------------------------------------------------------
# Batched kernel: lane-dense SoA layout, y block is (6, bt) with bt % 128 == 0.
# Row r of the block holds component r of all bt states.
# ----------------------------------------------------------------------------
def _pend3_kernel_soa(y_ref, o_ref, *, m1, m2, m3, l1, l2, l3, g):
    t1 = y_ref[0:1, :]
    t2 = y_ref[1:2, :]
    t3 = y_ref[2:3, :]
    p1 = y_ref[3:4, :]
    p2 = y_ref[4:5, :]
    p3 = y_ref[5:6, :]

    dth1, dth2, dth3, dp1, dp2, dp3 = _dynamics(
        t1, t2, t3, p1, p2, p3, m1=m1, m2=m2, m3=m3, l1=l1, l2=l2, l3=l3, g=g)

    # Full-lane (unmasked along lanes) row stores.
    o_ref[0:1, :] = dth1
    o_ref[1:2, :] = dth2
    o_ref[2:3, :] = dth3
    o_ref[3:4, :] = dp1
    o_ref[4:5, :] = dp2
    o_ref[5:6, :] = dp3


def pendelum3dof_forward_batched(t, y, *, m1, m2, m3, l1, l2, l3, g, block_b=512):
    """Batched forward: y is (B, 6) AoS of independent pendulum states -> (B, 6).

    Internally uses a lane-dense (6, B) SoA layout, tiled along the batch axis
    (batch grid axis marked 'parallel' so v7x's two TensorCores split it).
    """
    del t
    y = jnp.asarray(y, jnp.float32)
    B = y.shape[0]
    assert y.shape == (B, 6)

    # Batch tile: multiple of 128 lanes, capped by block_b (well under any VMEM budget,
    # including v7x's 64 MiB physical / 32 MiB scoped default).
    bt = max(128, min(int(block_b), 128 * pl.cdiv(B, 128)))
    Bp = bt * pl.cdiv(B, bt)

    y_soa = jnp.transpose(y)                                 # (6, B) SoA
    if Bp != B:
        y_soa = jnp.pad(y_soa, ((0, 0), (0, Bp - B)))        # zero pad is benign (det != 0)

    kernel = functools.partial(
        _pend3_kernel_soa,
        m1=float(m1), m2=float(m2), m3=float(m3),
        l1=float(l1), l2=float(l2), l3=float(l3), g=float(g),
    )
    out_soa = pl.pallas_call(
        kernel,
        out_shape=jax.ShapeDtypeStruct((6, Bp), jnp.float32),
        grid=(Bp // bt,),
        in_specs=[pl.BlockSpec((6, bt), lambda i: (0, i))],
        out_specs=pl.BlockSpec((6, bt), lambda i: (0, i)),
        compiler_params=pltpu.CompilerParams(dimension_semantics=("parallel",)),
    )(y_soa)

    return jnp.transpose(out_soa)[:B, :]


# ----------------------------------------------------------------------------
# Pure-JAX reference using autodiff of the Hamiltonian (mirrors the torch path).
# ----------------------------------------------------------------------------
def _reference_forward(y, *, m1, m2, m3, l1, l2, l3, g):
    def hamiltonian(yv):
        th, p = yv[:3], yv[3:]
        a11 = (m1 + m2 + m3) * l1 * l1
        a22 = (m2 + m3) * l2 * l2
        a33 = m3 * l3 * l3
        a12 = (m2 + m3) * l1 * l2
        a13 = m3 * l1 * l3
        a23 = m3 * l2 * l3
        M = jnp.array([[a11, 0.0, 0.0],
                       [0.0, a22, 0.0],
                       [0.0, 0.0, a33]], dtype=jnp.float32)
        M = M.at[0, 1].set(a12 * jnp.cos(th[0] - th[1]))
        M = M.at[1, 0].set(a12 * jnp.cos(th[0] - th[1]))
        M = M.at[0, 2].set(a13 * jnp.cos(th[0] - th[2]))
        M = M.at[2, 0].set(a13 * jnp.cos(th[0] - th[2]))
        M = M.at[1, 2].set(a23 * jnp.cos(th[1] - th[2]))
        M = M.at[2, 1].set(a23 * jnp.cos(th[1] - th[2]))
        K = 0.5 * jnp.dot(p, jnp.linalg.solve(M, p))
        U = -g * ((m1 + m2 + m3) * l1 * jnp.cos(th[0])
                  + (m2 + m3) * l2 * jnp.cos(th[1])
                  + m3 * l3 * jnp.cos(th[2]))
        return K + U

    dH = jax.grad(hamiltonian)(y[0].astype(jnp.float32))
    return jnp.concatenate([dH[3:6], -dH[0:3]])[None, :]


if __name__ == "__main__":
    # Deterministic physical parameters (the module's __init__ args).
    params = dict(m1=1.0, m2=2.0, m3=0.5, l1=1.0, l2=0.75, l3=0.5, g=9.81)

    key = jax.random.PRNGKey(0)
    k1, k2 = jax.random.split(key)
    t = jnp.float32(0.0)

    # 1) Single-state path — matches the module's forward(t, y) with y (1, 6).
    y1 = jax.random.normal(k1, (1, 6), dtype=jnp.float32)
    out1 = jax.block_until_ready(pendelum3dof_forward(t, y1, **params))
    ref1 = jax.block_until_ready(_reference_forward(y1, **params))
    np.testing.assert_allclose(np.asarray(out1), np.asarray(ref1), rtol=5e-4, atol=5e-4)

    # 2) Batched lane-dense path — 256 independent pendulum states.
    B = 256
    yb = jax.random.normal(k2, (B, 6), dtype=jnp.float32)
    outb = jax.block_until_ready(pendelum3dof_forward_batched(t, yb, **params))
    refb = jax.vmap(lambda row: _reference_forward(row[None, :], **params)[0])(yb)
    refb = jax.block_until_ready(refb)
    np.testing.assert_allclose(np.asarray(outb), np.asarray(refb), rtol=5e-4, atol=5e-4)

    print("KERNEL_OK")
</pallas_src>

<mosaic_0001>
module attributes {stable_mosaic.version = 11 : i64} {
  func.func @_pend3_kernel_single(%arg0: memref<1x6xf32, #tpu.memory_space<vmem>>, %arg1: memref<1x6xf32, #tpu.memory_space<vmem>>) attributes {dimension_semantics = [], scalar_prefetch = 0 : i64, scratch_operands = 0 : i64, tpu.core_type = #tpu.core_type<tc>} {
    %c0 = arith.constant 0 : index
    %c0_0 = arith.constant 0 : index
    %0 = vector.load %arg0[%c0, %c0_0] : memref<1x6xf32, #tpu.memory_space<vmem>>, vector<1x1xf32>
    %c0_1 = arith.constant 0 : index
    %c1 = arith.constant 1 : index
    %1 = vector.load %arg0[%c0_1, %c1] : memref<1x6xf32, #tpu.memory_space<vmem>>, vector<1x1xf32>
    %c0_2 = arith.constant 0 : index
    %c2 = arith.constant 2 : index
    %2 = vector.load %arg0[%c0_2, %c2] : memref<1x6xf32, #tpu.memory_space<vmem>>, vector<1x1xf32>
    %c0_3 = arith.constant 0 : index
    %c3 = arith.constant 3 : index
    %3 = vector.load %arg0[%c0_3, %c3] : memref<1x6xf32, #tpu.memory_space<vmem>>, vector<1x1xf32>
    %c0_4 = arith.constant 0 : index
    %c4 = arith.constant 4 : index
    %4 = vector.load %arg0[%c0_4, %c4] : memref<1x6xf32, #tpu.memory_space<vmem>>, vector<1x1xf32>
    %c0_5 = arith.constant 0 : index
    %c5 = arith.constant 5 : index
    %5 = vector.load %arg0[%c0_5, %c5] : memref<1x6xf32, #tpu.memory_space<vmem>>, vector<1x1xf32>
    %6 = math.sin %0 : vector<1x1xf32>
    %7 = math.cos %0 : vector<1x1xf32>
    %8 = math.sin %1 : vector<1x1xf32>
    %9 = math.cos %1 : vector<1x1xf32>
    %10 = math.sin %2 : vector<1x1xf32>
    %11 = math.cos %2 : vector<1x1xf32>
    %12 = arith.mulf %7, %9 : vector<1x1xf32>
    %13 = arith.mulf %6, %8 : vector<1x1xf32>
    %14 = arith.addf %12, %13 : vector<1x1xf32>
    %15 = arith.mulf %7, %11 : vector<1x1xf32>
    %16 = arith.mulf %6, %10 : vector<1x1xf32>
    %17 = arith.addf %15, %16 : vector<1x1xf32>
    %18 = arith.mulf %9, %11 : vector<1x1xf32>
    %19 = arith.mulf %8, %10 : vector<1x1xf32>
    %20 = arith.addf %18, %19 : vector<1x1xf32>
    %21 = arith.mulf %6, %9 : vector<1x1xf32>
    %22 = arith.mulf %7, %8 : vector<1x1xf32>
    %23 = arith.subf %21, %22 : vector<1x1xf32>
    %24 = arith.mulf %6, %11 : vector<1x1xf32>
    %25 = arith.mulf %7, %10 : vector<1x1xf32>
    %26 = arith.subf %24, %25 : vector<1x1xf32>
    %27 = arith.mulf %8, %11 : vector<1x1xf32>
    %28 = arith.mulf %9, %10 : vector<1x1xf32>
    %29 = arith.subf %27, %28 : vector<1x1xf32>
    %cst = arith.constant 1.875000e+00 : f32
    %30 = vector.broadcast %cst : f32 to vector<1x1xf32>
    %31 = arith.mulf %30, %14 : vector<1x1xf32>
    %cst_6 = arith.constant 2.500000e-01 : f32
    %32 = vector.broadcast %cst_6 : f32 to vector<1x1xf32>
    %33 = arith.mulf %32, %17 : vector<1x1xf32>
    %cst_7 = arith.constant 1.875000e-01 : f32
    %34 = vector.broadcast %cst_7 : f32 to vector<1x1xf32>
    %35 = arith.mulf %34, %20 : vector<1x1xf32>
    %36 = arith.mulf %35, %35 : vector<1x1xf32>
    %cst_8 = arith.constant 0.17578125 : f32
    %37 = vector.broadcast %cst_8 : f32 to vector<1x1xf32>
    %38 = arith.subf %37, %36 : vector<1x1xf32>
    %cst_9 = arith.constant 3.500000e+00 : f32
    %39 = vector.broadcast %cst_9 : f32 to vector<1x1xf32>
    %40 = arith.mulf %39, %38 : vector<1x1xf32>
    %cst_10 = arith.constant 1.250000e-01 : f32
    %41 = vector.broadcast %cst_10 : f32 to vector<1x1xf32>
    %42 = arith.mulf %31, %41 : vector<1x1xf32>
    %43 = arith.mulf %35, %33 : vector<1x1xf32>
    %44 = arith.subf %42, %43 : vector<1x1xf32>
    %45 = arith.mulf %31, %44 : vector<1x1xf32>
    %46 = arith.subf %40, %45 : vector<1x1xf32>
    %47 = arith.mulf %31, %35 : vector<1x1xf32>
    %cst_11 = arith.constant 1.406250e+00 : f32
    %48 = vector.broadcast %cst_11 : f32 to vector<1x1xf32>
    %49 = arith.mulf %48, %33 : vector<1x1xf32>
    %50 = arith.subf %47, %49 : vector<1x1xf32>
    %51 = arith.mulf %33, %50 : vector<1x1xf32>
    %52 = arith.addf %46, %51 : vector<1x1xf32>
    %53 = arith.mulf %35, %35 : vector<1x1xf32>
    %cst_12 = arith.constant 0.17578125 : f32
    %54 = vector.broadcast %cst_12 : f32 to vector<1x1xf32>
    %55 = arith.subf %54, %53 : vector<1x1xf32>
    %56 = arith.mulf %33, %35 : vector<1x1xf32>
    %cst_13 = arith.constant 1.250000e-01 : f32
    %57 = vector.broadcast %cst_13 : f32 to vector<1x1xf32>
    %58 = arith.mulf %31, %57 : vector<1x1xf32>
    %59 = arith.subf %56, %58 : vector<1x1xf32>
    %60 = arith.mulf %31, %35 : vector<1x1xf32>
    %cst_14 = arith.constant 1.406250e+00 : f32
    %61 = vector.broadcast %cst_14 : f32 to vector<1x1xf32>
    %62 = arith.mulf %33, %61 : vector<1x1xf32>
    %63 = arith.subf %60, %62 : vector<1x1xf32>
    %64 = arith.mulf %33, %33 : vector<1x1xf32>
    %cst_15 = arith.constant 4.375000e-01 : f32
    %65 = vector.broadcast %cst_15 : f32 to vector<1x1xf32>
    %66 = arith.subf %65, %64 : vector<1x1xf32>
    %67 = arith.mulf %31, %33 : vector<1x1xf32>
    %cst_16 = arith.constant 3.500000e+00 : f32
    %68 = vector.broadcast %cst_16 : f32 to vector<1x1xf32>
    %69 = arith.mulf %68, %35 : vector<1x1xf32>
    %70 = arith.subf %67, %69 : vector<1x1xf32>
    %71 = arith.mulf %31, %31 : vector<1x1xf32>
    %cst_17 = arith.constant 4.921875 : f32
    %72 = vector.broadcast %cst_17 : f32 to vector<1x1xf32>
    %73 = arith.subf %72, %71 : vector<1x1xf32>
    %cst_18 = arith.constant 1.000000e+00 : f32
    %74 = vector.broadcast %cst_18 : f32 to vector<1x1xf32>
    %75 = arith.divf %74, %52 : vector<1x1xf32>
    %76 = arith.mulf %55, %3 : vector<1x1xf32>
    %77 = arith.mulf %59, %4 : vector<1x1xf32>
    %78 = arith.addf %76, %77 : vector<1x1xf32>
    %79 = arith.mulf %63, %5 : vector<1x1xf32>
    %80 = arith.addf %78, %79 : vector<1x1xf32>
    %81 = arith.mulf %80, %75 : vector<1x1xf32>
    %82 = arith.mulf %59, %3 : vector<1x1xf32>
    %83 = arith.mulf %66, %4 : vector<1x1xf32>
    %84 = arith.addf %82, %83 : vector<1x1xf32>
    %85 = arith.mulf %70, %5 : vector<1x1xf32>
    %86 = arith.addf %84, %85 : vector<1x1xf32>
    %87 = arith.mulf %86, %75 : vector<1x1xf32>
    %88 = arith.mulf %63, %3 : vector<1x1xf32>
    %89 = arith.mulf %70, %4 : vector<1x1xf32>
    %90 = arith.addf %88, %89 : vector<1x1xf32>
    %91 = arith.mulf %73, %5 : vector<1x1xf32>
    %92 = arith.addf %90, %91 : vector<1x1xf32>
    %93 = arith.mulf %92, %75 : vector<1x1xf32>
    %cst_19 = arith.constant -1.875000e+00 : f32
    %94 = vector.broadcast %cst_19 : f32 to vector<1x1xf32>
    %95 = arith.mulf %94, %23 : vector<1x1xf32>
    %96 = arith.mulf %95, %81 : vector<1x1xf32>
    %97 = arith.mulf %96, %87 : vector<1x1xf32>
    %cst_20 = arith.constant 2.500000e-01 : f32
    %98 = vector.broadcast %cst_20 : f32 to vector<1x1xf32>
    %99 = arith.mulf %98, %26 : vector<1x1xf32>
    %100 = arith.mulf %99, %81 : vector<1x1xf32>
    %101 = arith.mulf %100, %93 : vector<1x1xf32>
    %102 = arith.subf %97, %101 : vector<1x1xf32>
    %cst_21 = arith.constant 3.433500e+01 : f32
    %103 = vector.broadcast %cst_21 : f32 to vector<1x1xf32>
    %104 = arith.mulf %103, %6 : vector<1x1xf32>
    %105 = arith.subf %102, %104 : vector<1x1xf32>
    %cst_22 = arith.constant 1.875000e+00 : f32
    %106 = vector.broadcast %cst_22 : f32 to vector<1x1xf32>
    %107 = arith.mulf %106, %23 : vector<1x1xf32>
    %108 = arith.mulf %107, %81 : vector<1x1xf32>
    %109 = arith.mulf %108, %87 : vector<1x1xf32>
    %cst_23 = arith.constant 1.875000e-01 : f32
    %110 = vector.broadcast %cst_23 : f32 to vector<1x1xf32>
    %111 = arith.mulf %110, %29 : vector<1x1xf32>
    %112 = arith.mulf %111, %87 : vector<1x1xf32>
    %113 = arith.mulf %112, %93 : vector<1x1xf32>
    %114 = arith.subf %109, %113 : vector<1x1xf32>
    %cst_24 = arith.constant 18.3937492 : f32
    %115 = vector.broadcast %cst_24 : f32 to vector<1x1xf32>
    %116 = arith.mulf %115, %8 : vector<1x1xf32>
    %117 = arith.subf %114, %116 : vector<1x1xf32>
    %cst_25 = arith.constant 2.500000e-01 : f32
    %118 = vector.broadcast %cst_25 : f32 to vector<1x1xf32>
    %119 = arith.mulf %118, %26 : vector<1x1xf32>
    %120 = arith.mulf %119, %81 : vector<1x1xf32>
    %121 = arith.mulf %120, %93 : vector<1x1xf32>
    %cst_26 = arith.constant 1.875000e-01 : f32
    %122 = vector.broadcast %cst_26 : f32 to vector<1x1xf32>
    %123 = arith.mulf %122, %29 : vector<1x1xf32>
    %124 = arith.mulf %123, %87 : vector<1x1xf32>
    %125 = arith.mulf %124, %93 : vector<1x1xf32>
    %126 = arith.addf %121, %125 : vector<1x1xf32>
    %cst_27 = arith.constant 2.452500e+00 : f32
    %127 = vector.broadcast %cst_27 : f32 to vector<1x1xf32>
    %128 = arith.mulf %127, %10 : vector<1x1xf32>
    %129 = arith.subf %126, %128 : vector<1x1xf32>
    %130 = tpu.iota {dimensions = array<i32: 1>} : vector<1x6xi32>
    %131 = vector.shape_cast %81 : vector<1x1xf32> to vector<1x1xf32>
    %132 = vector.broadcast %131 : vector<1x1xf32> to vector<1x6xf32>
    %c1_i32 = arith.constant 1 : i32
    %133 = vector.broadcast %c1_i32 : i32 to vector<1x6xi32>
    %134 = arith.cmpi eq, %130, %133 : vector<1x6xi32>
    %135 = vector.shape_cast %87 : vector<1x1xf32> to vector<1x1xf32>
    %136 = vector.broadcast %135 : vector<1x1xf32> to vector<1x6xf32>
    %137 = arith.select %134, %136, %132 : vector<1x6xi1>, vector<1x6xf32>
    %c2_i32 = arith.constant 2 : i32
    %138 = vector.broadcast %c2_i32 : i32 to vector<1x6xi32>
    %139 = arith.cmpi eq, %130, %138 : vector<1x6xi32>
    %140 = vector.shape_cast %93 : vector<1x1xf32> to vector<1x1xf32>
    %141 = vector.broadcast %140 : vector<1x1xf32> to vector<1x6xf32>
    %142 = arith.select %139, %141, %137 : vector<1x6xi1>, vector<1x6xf32>
    %c3_i32 = arith.constant 3 : i32
    %143 = vector.broadcast %c3_i32 : i32 to vector<1x6xi32>
    %144 = arith.cmpi eq, %130, %143 : vector<1x6xi32>
    %145 = vector.shape_cast %105 : vector<1x1xf32> to vector<1x1xf32>
    %146 = vector.broadcast %145 : vector<1x1xf32> to vector<1x6xf32>
    %147 = arith.select %144, %146, %142 : vector<1x6xi1>, vector<1x6xf32>
    %c4_i32 = arith.constant 4 : i32
    %148 = vector.broadcast %c4_i32 : i32 to vector<1x6xi32>
    %149 = arith.cmpi eq, %130, %148 : vector<1x6xi32>
    %150 = vector.shape_cast %117 : vector<1x1xf32> to vector<1x1xf32>
    %151 = vector.broadcast %150 : vector<1x1xf32> to vector<1x6xf32>
    %152 = arith.select %149, %151, %147 : vector<1x6xi1>, vector<1x6xf32>
    %c5_i32 = arith.constant 5 : i32
    %153 = vector.broadcast %c5_i32 : i32 to vector<1x6xi32>
    %154 = arith.cmpi eq, %130, %153 : vector<1x6xi32>
    %155 = vector.shape_cast %129 : vector<1x1xf32> to vector<1x1xf32>
    %156 = vector.broadcast %155 : vector<1x1xf32> to vector<1x6xf32>
    %157 = arith.select %154, %156, %152 : vector<1x6xi1>, vector<1x6xf32>
    %c0_28 = arith.constant 0 : index
    %c0_29 = arith.constant 0 : index
    %158 = vector.load %arg1[%c0_28, %c0_29] : memref<1x6xf32, #tpu.memory_space<vmem>>, vector<1x6xf32>
    tpu.vector_store %arg1[%c0_28, %c0_29], %157 {strides = array<i32>} : memref<1x6xf32, #tpu.memory_space<vmem>>, vector<1x6xf32>,
    return
  }
}

</mosaic_0001>

<bundles_post_ra>
// kernel: tpu_custom_call.1
= control target key start
LH: loop header
LB: loop body
LE: loop exit
PB: predicated region body
PF: predicated region fallthrough
CT: control target
= control target key end

     0   :  { %6 = vsyncpa [#allocation3], 0  ;;  %s830_s0 = inlined_call_operand.hbm [shape: f32[1,6], index: 0, kind: input, shape index: {}]   ;;  %s831_s1 = inlined_call_operand.hbm [shape: f32[1,6], index: 1, kind: output, shape index: {}]  }
   0x1   :  { %7 = vsyncpa [#allocation4], 0  ;;  %s13_s8 = sshll.u32 %s830_s0, 4  ;;  %s663_s9 = smov [#allocation2]   ;;  %s14_s8 = int_to_ptr.hbm [resolvable:$true] %s13_s8 }
   0x2   :  { %s15_s10 = sshll.u32 %s663_s9, 4  ;;  %s16_s10 = int_to_ptr.vmem [resolvable:$true] %s15_s10 }
   0x3   :  { %18 = dma.hbm_to_vmem [thread:$0]  %s14_s8, 16, %s16_s10, [#allocation3]  }
   0x4   :  { %659 = dma.done.wait [#allocation3], 16  }
   0x5   :  { %660 = vsyncadd [#allocation3], 4294967280  ;;  %v664_v0 = vmov 0   ;;  %v693_v1 = vld [vmem:[#allocation2] sm:$0x1]  ;;  %s671_s0 = smov 127  }
   0x6   :  { %606 = vset.pattern.permute.xlu0 %v664_v0  ;;  %v27_v2 = vand.u32 2139095040, %v693_v1  ;;  %v24_v4 = vand.u32 2147483647, %v693_v1  ;;  %v665_v13 = vmov 683565275   ;;  %vm26_vm12 = vcmp.lt.s32.totalorder %v693_v1, 0 }
   0x7   :  { %v666_v15 = vmov 2475754826   ;;  %v667_v17 = vmov 2131351028   ;;  %v668_v19 = vmov 2102212464  }
   0x8   :  { %v28_v3 = vshrl.u32 %v27_v2, 23  ;;  %v31_v7 = vand.u32 8388607, %v24_v4  ;;  %v669_v21 = vmov 920167782   ;;  %s672_s11 = smov 126  }
   0x9   :  { %v670_v27 = vmov 1326507024   ;;  %vm25_vm13 = vcmp.le.f32.partialorder %v24_v4, 0.7853982  ;;  %s673_s12 = smov 1   ;;  %s674_s13 = smov 125  }
   0xa   :  { %v582_v5 = vadd.s32 4294967169, %v28_v3  ;;  %v32_v10 = vor.u32 8388608, %v31_v7  ;;  %s675_s14 = smov 123   ;;  %s676_s15 = smov 124  }
   0xb   :  { %s678_s16 = smov [#allocation5]   ;;  %s572_s20 = sshll.u32 %s831_s1, 4  ;;  %s573_s20 = int_to_ptr.hbm [resolvable:$true] %s572_s20 }
   0xc   :  { %v34_v6 = vadd.s32 1, %v582_v5  ;;  %v702_v29 = vshll.u32 %v32_v10, 8  ;;  %s570_s17 = sshll.u32 %s678_s16, 4  ;;  %s571_s17 = int_to_ptr.vmem [resolvable:$true] %s570_s17 }
   0xe   :  { %vm35_vm0 = vcmp.gt.s32.totalorder %v34_v6, 0  ;;  %v73_v41 = vand.u32 65535, %v702_v29  ;;  %v74_v42 = vshrl.u32 %v702_v29, 16 }
   0xf   :  { %v36_v8 = vsel %vm35_vm0, %v34_v6, 0 }
  0x10   :  { %v38_v9 = vand.u32 31, %v36_v8  ;;  %v699_v11 = vshrl.u32 %v36_v8, 5 }
  0x12   :  { %v39_v12 = vsub.s32 32, %v38_v9  ;;  %v41_v14 = vshll.u32 %v665_v13, %v38_v9  ;;  %v44_v16 = vshll.u32 %v666_v15, %v38_v9  ;;  %v47_v18 = vshll.u32 %v667_v17, %v38_v9 }
  0x13   :  { %v50_v20 = vshll.u32 %v668_v19, %v38_v9  ;;  %v53_v22 = vshll.u32 %v669_v21, %v38_v9  ;;  %vm56_vm1 = vcmp.lt.s32.totalorder %v699_v11, 1  ;;  %vm59_vm2 = vcmp.lt.s32.totalorder %v699_v11, 4 }
  0x14   :  { %v42_v23 = vshrl.u32 %v666_v15, %v39_v12  ;;  %v45_v24 = vshrl.u32 %v667_v17, %v39_v12  ;;  %v48_v25 = vshrl.u32 %v668_v19, %v39_v12  ;;  %v51_v26 = vshrl.u32 %v669_v21, %v39_v12 }
  0x15   :  { %v54_v28 = vshrl.u32 %v670_v27, %v39_v12  ;;  %vm58_vm3 = vcmp.lt.s32.totalorder %v699_v11, 3  ;;  %vm57_vm4 = vcmp.lt.s32.totalorder %v699_v11, 2  ;;  %v40_v49 = vshrl.u32 %v665_v13, %v39_v12 }
  0x16   :  { %v43_v30 = vor.u32 %v42_v23, %v41_v14  ;;  %v46_v31 = vor.u32 %v45_v24, %v44_v16  ;;  %v49_v32 = vor.u32 %v48_v25, %v47_v18  ;;  %v52_v33 = vor.u32 %v51_v26, %v50_v20 }
  0x17   :  { %v55_v34 = vor.u32 %v54_v28, %v53_v22 }
  0x18   :  { %v64_v35 = vsel %vm56_vm1, %v43_v30, %v46_v31  ;;  %v68_v36 = vsel %vm56_vm1, %v46_v31, %v49_v32  ;;  %v65_v37 = vsel %vm59_vm2, %v52_v33, 920167782  ;;  %v60_v62 = vsel %vm56_vm1, %v40_v49, %v43_v30 }
  0x19   :  { %v69_v38 = vsel %vm59_vm2, %v55_v34, 1326507024  ;;  %v66_v39 = vsel %vm58_vm3, %v49_v32, %v65_v37  ;;  %v61_v2 = vsel %vm59_vm2, %v49_v32, 2102212464  ;;  %vm167_vm1 = vweird.f32 %v693_v1 }
  0x1a   :  { %v70_v40 = vsel %vm58_vm3, %v52_v33, %v69_v38  ;;  %v67_v43 = vsel %vm57_vm4, %v64_v35, %v66_v39  ;;  %v62_v13 = vsel %vm58_vm3, %v46_v31, %v61_v2 }
  0x1b   :  { %v71_v44 = vsel %vm57_vm4, %v68_v36, %v70_v40  ;;  %v97_v47 = vand.u32 65535, %v67_v43  ;;  %v98_v48 = vshrl.u32 %v67_v43, 16  ;;  %v63_v21 = vsel %vm57_vm4, %v60_v62, %v62_v13 }
  0x1c   :  { %v75_v45 = vand.u32 65535, %v71_v44  ;;  %v76_v46 = vshrl.u32 %v71_v44, 16  ;;  %v117_v25 = vmul.u32 %v702_v29, %v63_v21 }
  0x1d   :  { %v99_v53 = vmul.u32 %v97_v47, %v73_v41  ;;  %v100_v54 = vmul.u32 %v98_v48, %v73_v41  ;;  %v101_v55 = vmul.u32 %v97_v47, %v74_v42  ;;  %v102_v59 = vmul.u32 %v98_v48, %v74_v42 }
  0x1e   :  { %v77_v50 = vmul.u32 %v75_v45, %v73_v41  ;;  %v78_v51 = vmul.u32 %v76_v46, %v73_v41  ;;  %v79_v52 = vmul.u32 %v75_v45, %v74_v42  ;;  %v80_v56 = vmul.u32 %v76_v46, %v74_v42 }
  0x1f   :  { %v103_v60 = vshll.u32 %v100_v54, 16  ;;  %v105_v61 = vshll.u32 %v101_v55, 16  ;;  %v104_v10 = vshrl.u32 %v100_v54, 16  ;;  %v106_v17 = vshrl.u32 %v101_v55, 16 }
  0x20   :  { %v81_v57 = vshll.u32 %v78_v51, 16  ;;  %v83_v58 = vshll.u32 %v79_v52, 16  ;;  %v82_v6 = vshrl.u32 %v78_v51, 16  ;;  %v84_v14 = vshrl.u32 %v79_v52, 16 }
  0x21   :  { %vm107_vm6 = vc.u32 %v99_v53, %v103_v60  ;;  %v109_v5 = vadd.s32 %v103_v60, %v99_v53 }
  0x22   :  { %vm85_vm5 = vc.u32 %v77_v50, %v81_v57  ;;  %v87_v63 = vadd.s32 %v81_v57, %v77_v50  ;;  %v108_v8 = vsel %vm107_vm6, 1, %v664_v0 }
  0x23   :  { %v86_v3 = vsel %vm85_vm5, 1, %v664_v0  ;;  %v110_v12 = vadd.s32 %v108_v8, %v102_v59  ;;  %vm111_vm8 = vc.u32 %v109_v5, %v105_v61  ;;  %v113_v20 = vadd.s32 %v109_v5, %v105_v61 }
  0x24   :  { %v88_v7 = vadd.s32 %v86_v3, %v80_v56  ;;  %vm89_vm7 = vc.u32 %v87_v63, %v83_v58  ;;  %v112_v16 = vsel %vm111_vm8, 1, %v664_v0 }
  0x25   :  { %v90_v9 = vsel %vm89_vm7, 1, %v664_v0  ;;  %v114_v18 = vadd.s32 %v112_v16, %v110_v12 }
  0x26   :  { %v92_v15 = vadd.s32 %v90_v9, %v88_v7 }
  0x27   :  { %v115_v22 = vadd.s32 %v114_v18, %v104_v10 }
  0x28   :  { %v93_v19 = vadd.s32 %v92_v15, %v82_v6 }
  0x29   :  { %v116_v24 = vadd.s32 %v115_v22, %v106_v17 }
  0x2a   :  { %v94_v23 = vadd.s32 %v93_v19, %v84_v14 }
  0x2b   :  { %v120_v26 = vadd.s32 1, %v116_v24 }
  0x2c   :  { %vm119_vm9 = vc.u32 %v94_v23, %v113_v20  ;;  %v118_v11 = vadd.s32 %v113_v20, %v94_v23 }
  0x2d   :  { %v121_v27 = vsel %vm119_vm9, %v120_v26, %v116_v24 }
  0x2e   :  { %v122_v28 = vadd.s32 %v121_v27, %v117_v25 }
  0x30   :  { %v123_v30 = vadd.s32 536870912, %v122_v28 }
  0x32   :  { %v124_v31 = vshrl.u32 %v123_v30, 30 }
  0x34   :  { %v125_v32 = vshll.u32 %v124_v31, 30  ;;  %v148_v51 = vsub.s32 4, %v124_v31 }
  0x36   :  { %v126_v33 = vsub.s32 %v122_v28, %v125_v32  ;;  %v149_v56 = vsel %vm26_vm12, %v148_v51, %v124_v31 }
  0x37   :  { %v151_v59 = vsel %vm25_vm13, 0, %v149_v56 }
  0x38   :  { %vm127_vm10 = vcmp.lt.s32.totalorder %v126_v33, 0  ;;  %v128_v34 = vsub.s32 0, %v126_v33  ;;  %v168_v2 = vadd.s32 3, %v151_v59  ;;  %v323_v3 = vand.u32 3, %v151_v59 }
  0x3a   :  { %v129_v35 = vsel %vm127_vm10, %v128_v34, %v126_v33  ;;  %v169_v8 = vand.u32 3, %v168_v2  ;;  %vm328_vm14 = vcmp.eq.s32.totalorder %v323_v3, 2  ;;  %vm325_vm15 = vcmp.eq.s32.totalorder %v323_v3, 0 }
  0x3b   :  { %v130_v36 = vclz %v129_v35  ;;  %vm324_vm0 = vcmp.lt.s32.totalorder %v323_v3, 2 }
  0x3c   :  { %vm171_vm2 = vcmp.eq.s32.totalorder %v169_v8, 0  ;;  %vm174_vm3 = vcmp.eq.s32.totalorder %v169_v8, 2  ;;  %vm170_vm4 = vcmp.lt.s32.totalorder %v169_v8, 2 }
  0x3d   :  { %v583_v37 = vadd.s32 4294967294, %v130_v36 }
  0x3f   :  { %vm584_vm11 = vcmp.lt.s32.totalorder %v583_v37, 0 }
  0x40   :  { %v133_v38 = vsel %vm584_vm11, 0, %v583_v37 }
  0x41   :  { %v134_v39 = vsub.s32 32, %v133_v38  ;;  %v135_v40 = vshll.u32 %v126_v33, %v133_v38  ;;  %v138_v41 = vsub.s32 4294967266, %v133_v38 }
  0x43   :  { %v136_v29 = vshrl.u32 %v118_v11, %v134_v39  ;;  %v139_v42 = vadd.s32 127, %v138_v41 }
  0x45   :  { %v137_v43 = vor.u32 %v136_v29, %v135_v40  ;;  %v140_v44 = vshll.u32 %v139_v42, 23 }
  0x47   :  { %v141_v45 = vor.u32 4788187, %v140_v44  ;;  %v144_v46 = vcvt.s32.f32 %v137_v43 }
  0x49   :  { %v142_v47 = vand.u32 2147483647, %v141_v45 }
  0x4b   :  { %v145_v48 = vmul.f32 %v144_v46, %v142_v47 }
  0x4d   :  { %v146_v49 = vxor.u32 2147483648, %v145_v48 }
  0x4f   :  { %v147_v50 = vsel %vm26_vm12, %v146_v49, %v145_v48 }
  0x50   :  { %v150_v52 = vsel %vm25_vm13, %v693_v1, %v147_v50 }
  0x51   :  { %v152_v53 = vmul.f32 %v150_v52, %v150_v52 }
  0x53   :  { %v153_v54 = vmul.f32 -0.001358992, %v152_v53  ;;  %v160_v55 = vmul.f32 -0.00019511016, %v152_v53 }
  0x55   :  { %v154_v57 = vadd.f32 0.041655596, %v153_v54  ;;  %v161_v58 = vadd.f32 0.008332121, %v160_v55 }
  0x57   :  { %v155_v60 = vmul.f32 %v154_v57, %v152_v53  ;;  %v162_v61 = vmul.f32 %v161_v58, %v152_v53 }
  0x59   :  { %v156_v62 = vadd.f32 -0.4999988, %v155_v60  ;;  %v163_v63 = vadd.f32 -0.16666654, %v162_v61 }
  0x5b   :  { %v157_v5 = vmul.f32 %v156_v62, %v152_v53  ;;  %v164_v4 = vmul.f32 %v163_v63, %v152_v53 }
  0x5d   :  { %v158_v6 = vadd.f32 1.0, %v157_v5  ;;  %v165_v7 = vadd.f32 1.0, %v164_v4 }
  0x5f   :  { %v166_v9 = vmul.f32 %v165_v7, %v150_v52  ;;  %v175_v10 = vxor.u32 2147483648, %v158_v6 }
  0x61   :  { %v172_v12 = vxor.u32 2147483648, %v166_v9  ;;  %v330_v13 = vsel %vm328_vm14, %v175_v10, %v166_v9  ;;  %v176_v18 = vsel %vm174_vm3, %v175_v10, %v166_v9  ;;  %vm563_vm14 = vcmask 40960  }
  0x63   :  { %v327_v14 = vsel %vm325_vm15, %v158_v6, %v172_v12  ;;  %v173_v17 = vsel %vm171_vm2, %v158_v6, %v172_v12 }
  0x64   :  { %v331_v15 = vsel %vm324_vm0, %v327_v14, %v330_v13  ;;  %v177_v19 = vsel %vm170_vm4, %v173_v17, %v176_v18 }
  0x65   :  { %v743_v16 = vsel %vm167_vm1, nan, %v331_v15  ;;  %v749_v20 = vsel %vm167_vm1, nan, %v177_v19 }
  0x66   :  { %334 = vrot.lane.b32.xlu1 %v743_v16, %s671_s0  ;;  %344 = vrot.lane.b32.xlu0 %v743_v16, %s672_s11 }
  0x6e   :  { %339 = vrot.lane.b32.xlu1 %v749_v20, %s671_s0  ;;  %348 = vrot.lane.b32.xlu0 %v749_v20, %s672_s11 }
  0xd8   :  { %v755_v21 = vpop.permute.xlu1 %334  ;;  %v757_v22 = vpop.permute.xlu0 %344 }
  0xd9   :  { %v337_v23 = vmul.f32 %v755_v21, %v743_v16  ;;  %v347_v26 = vmul.f32 %v757_v22, %v743_v16 }
  0xe0   :  { %v761_v24 = vpop.permute.xlu1 %339  ;;  %v763_v25 = vpop.permute.xlu0 %348 }
  0xe1   :  { %v342_v27 = vmul.f32 %v761_v24, %v749_v20  ;;  %v351_v28 = vmul.f32 %v763_v25, %v749_v20 }
  0xe3   :  { %v343_v30 = vadd.f32 %v342_v27, %v337_v23  ;;  %v352_v31 = vadd.f32 %v351_v28, %v347_v26  ;;  %v505_v26 = vmul.f32 18.39375, %v749_v20  ;;  %v677_v27 = vmov 1  }
  0xe4   :  { %605 = vset.pattern.permute.xlu2 %v677_v27  ;;  %604 = vset.pattern.permute.xlu1 %v677_v27  ;;  %v357_v28 = vmul.f32 %v763_v25, %v743_v16 }
  0xe5   :  { %v361_v32 = vmul.f32 0.1875, %v343_v30  ;;  %v771_v33 = vmul.f32 0.25, %v352_v31  ;;  %v781_v37 = vmul.f32 1.875, %v343_v30 }
  0xe7   :  { %383 = vrot.lane.b32.xlu0 %v361_v32, %s671_s0  ;;  %367 = vrot.lane.b32.xlu2 %v771_v33, %s673_s12  ;;  %v403_v34 = vmul.f32 3.5, %v361_v32  ;;  %v387_v38 = vmul.f32 1.40625, %v771_v33  ;;  %v365_v29 = vmul.f32 0.125, %v781_v37  ;;  %v402_v47 = vmul.f32 %v771_v33, %v781_v37 }
  0xe8   :  { %v362_v52 = vmul.f32 %v361_v32, %v361_v32  ;;  %v400_v15 = vmul.f32 %v771_v33, %v771_v33  ;;  %v409_v30 = vmul.f32 %v781_v37, %v781_v37 }
  0xea   :  { %v363_v53 = vsub.f32 0.17578125, %v362_v52  ;;  %v401_v19 = vsub.f32 0.4375, %v400_v15  ;;  %v512_v52 = vmul.f32 2.4525, %v749_v20 }
  0xec   :  { %v364_v54 = vmul.f32 3.5, %v363_v53 }
  0xef   :  { %405 = vrot.lane.b32.xlu0 %v403_v34, %s671_s0 }
  0xf7   :  { %431 = vrot.lane.b32.xlu0 %v693_v1, %s674_s13 }
  0xff   :  { %427 = vrot.lane.b32.xlu0 %v693_v1, %s672_s11 }
 0x141   :  { %v368_v35 = vpop.permute.xlu2 %367 }
 0x142   :  { %v370_v36 = vmul.f32 %v368_v35, %v361_v32  ;;  %v356_v32 = vmul.f32 %v757_v22, %v749_v20  ;;  %v410_v35 = vsub.f32 4.921875, %v409_v30  ;;  %v354_v22 = vmul.f32 %v761_v24, %v743_v16 }
 0x144   :  { %372 = vrot.lane.b32.xlu2 %v370_v36, %s671_s0  ;;  %v358_v34 = vsub.f32 %v356_v32, %v357_v28 }
 0x159   :  { %v384_v11 = vpop.permute.xlu0 %383 }
 0x15a   :  { %v386_v39 = vmul.f32 %v384_v11, %v781_v37 }
 0x15c   :  { %v785_v40 = vsub.f32 %v386_v39, %v387_v38  ;;  %v484_v39 = vmul.f32 0.25, %v358_v34 }
 0x15e   :  { %v389_v41 = vmul.f32 %v785_v40, %v771_v33 }
 0x160   :  { %391 = vrot.lane.b32.xlu2 %v389_v41, %s673_s12 }
 0x161   :  { %v406_v46 = vpop.permute.xlu0 %405 }
 0x162   :  { %v408_v48 = vsub.f32 %v402_v47, %v406_v46 }
 0x168   :  { %436 = vrot.lane.b32.xlu2 %v693_v1, %s675_s14 }
 0x170   :  { %396 = vrot.lane.b32.xlu2 %v365_v29, %s673_s12 }
 0x19e   :  { %v373_v42 = vpop.permute.xlu2 %372 }
 0x19f   :  { %v375_v43 = vsub.f32 %v365_v29, %v373_v42 }
 0x1a1   :  { %v376_v44 = vmul.f32 %v375_v43, %v781_v37  ;;  %v353_v37 = vmul.f32 %v755_v21, %v749_v20 }
 0x1a3   :  { %378 = vrot.lane.b32.xlu1 %v376_v44, %s673_s12 }
 0x1ab   :  { %447 = vrot.lane.b32.xlu1 %v693_v1, %s676_s15  ;;  %v432_v1 = vpop.permute.xlu0 %431 }
 0x1ac   :  { %v463_v33 = vmul.f32 %v432_v1, %v785_v40 }
 0x1b3   :  { %v428_v62 = vpop.permute.xlu0 %427 }
 0x1b4   :  { %v430_v5 = vmul.f32 %v428_v62, %v363_v53 }
 0x1ba   :  { %v392_v45 = vpop.permute.xlu2 %391 }
 0x1c2   :  { %v437_v49 = vpop.permute.xlu2 %436 }
 0x1c3   :  { %v439_v50 = vmul.f32 %v437_v49, %v785_v40  ;;  %v456_v51 = vmul.f32 %v437_v49, %v408_v48  ;;  %v466_v11 = vmul.f32 %v437_v49, %v410_v35 }
 0x1c5   :  { %441 = vrot.lane.b32.xlu2 %v439_v50, %s673_s12  ;;  %458 = vrot.lane.b32.xlu0 %v456_v51, %s673_s12 }
 0x1ca   :  { %v397_v58 = vpop.permute.xlu2 %396 }
 0x1cb   :  { %v399_v59 = vsub.f32 %v370_v36, %v397_v58  ;;  %v488_v58 = vmul.f32 34.335, %v749_v20 }
 0x1cd   :  { %v434_v63 = vmul.f32 %v432_v1, %v399_v59  ;;  %v446_v40 = vmul.f32 %v428_v62, %v399_v59 }
 0x1cf   :  { %v435_v8 = vadd.f32 %v434_v63, %v430_v5 }
 0x215   :  { %v379_v55 = vpop.permute.xlu1 %378 }
 0x216   :  { %v381_v56 = vsub.f32 %v364_v54, %v379_v55 }
 0x218   :  { %v394_v57 = vadd.f32 %v392_v45, %v381_v56  ;;  %v355_v45 = vsub.f32 %v353_v37, %v354_v22 }
 0x21a   :  { %609 = vrcp.f32 %v394_v57  ;;  %v422_v3 = vand.u32 2147483648, %v394_v57  ;;  %v420_v6 = vand.u32 2147483647, %v394_v57  ;;  %vm416_vm6 = vweird.f32 %v394_v57 }
 0x21b   :  { %v493_v50 = vmul.f32 0.1875, %v355_v45  ;;  %v473_v24 = vmul.f32 -1.875, %v355_v45  ;;  %v490_v53 = vmul.f32 1.875, %v355_v45 }
 0x21c   :  { %v423_v10 = vor.u32 1.1754944e-38, %v422_v3  ;;  %vm421_vm8 = vcmp.eq.f32.partialorder %v420_v6, 8.507059e+37 }
 0x21d   :  { %v448_v18 = vpop.permute.xlu1 %447 }
 0x21e   :  { %v450_v23 = vmul.f32 %v448_v18, %v401_v19  ;;  %v464_v31 = vmul.f32 %v448_v18, %v408_v48 }
 0x21f   :  { %v442_v7 = vpop.permute.xlu2 %441 }
 0x220   :  { %v610_v60 = vpop.eup %609  ;;  %v444_v12 = vadd.f32 %v442_v7, %v435_v8  ;;  %v465_v36 = vadd.f32 %v464_v31, %v463_v33  ;;  %v518_v7 = vlaneseq }
 0x221   :  { %v412_v61 = vmul.f32 %v610_v60, %v394_v57  ;;  %vm417_vm5 = vweird.f32 %v610_v60 }
 0x222   :  { %vm418_vm7 = vmor %vm416_vm6, %vm417_vm5  ;;  %v467_v41 = vadd.f32 %v466_v11, %v465_v36 }
 0x223   :  { %v413_v2 = vsub.f32 1.0, %v412_v61 }
 0x225   :  { %v414_v4 = vmul.f32 %v610_v60, %v413_v2 }
 0x227   :  { %v415_v9 = vadd.f32 %v610_v60, %v414_v4 }
 0x229   :  { %v419_v13 = vsel %vm418_vm7, %v610_v60, %v415_v9  ;;  %v519_v9 = vand.u32 127, %v518_v7 }
 0x22a   :  { %v424_v14 = vsel %vm421_vm8, %v423_v10, %v419_v13 }
 0x22b   :  { %469 = vrot.lane.b32.xlu1 %v424_v14, %s671_s0  ;;  %v445_v17 = vmul.f32 %v444_v12, %v424_v14  ;;  %vm525_vm9 = vcmp.eq.s32.totalorder %v519_v9, 1  ;;  %vm532_vm10 = vcmp.eq.s32.totalorder %v519_v9, 2  ;;  %vm539_vm11 = vcmp.eq.s32.totalorder %v519_v9, 3 }
 0x22c   :  { %vm547_vm12 = vcmp.eq.s32.totalorder %v519_v9, 4  ;;  %vm555_vm13 = vcmp.eq.s32.totalorder %v519_v9, 5 }
 0x22d   :  { %475 = vrot.lane.b32.xlu2 %v445_v17, %s671_s0 }
 0x233   :  { %452 = vrot.lane.b32.xlu1 %v450_v23, %s673_s12 }
 0x235   :  { %507 = vrot.lane.b32.xlu2 %v505_v26, %s671_s0 }
 0x237   :  { %v459_v47 = vpop.permute.xlu0 %458 }
 0x287   :  { %v476_v38 = vpop.permute.xlu2 %475 }
 0x288   :  { %v485_v42 = vmul.f32 %v484_v39, %v476_v38  ;;  %v478_v54 = vmul.f32 %v476_v38, %v473_v24  ;;  %v491_v55 = vmul.f32 %v490_v53, %v476_v38 }
 0x28f   :  { %v508_v2 = vpop.permute.xlu2 %507 }
 0x29d   :  { %v470_v29 = vpop.permute.xlu1 %469 }
 0x29e   :  { %v472_v43 = vmul.f32 %v470_v29, %v467_v41 }
 0x2a0   :  { %v486_v25 = vmul.f32 %v485_v42, %v472_v43  ;;  %496 = vrot.lane.b32.xlu1 %v472_v43, %s673_s12 }
 0x2a5   :  { %v453_v44 = vpop.permute.xlu1 %452 }
 0x2a6   :  { %v455_v46 = vadd.f32 %v453_v44, %v446_v40 }
 0x2a8   :  { %v461_v48 = vadd.f32 %v459_v47, %v455_v46 }
 0x2aa   :  { %v462_v49 = vmul.f32 %v461_v48, %v424_v14 }
 0x2ac   :  { %480 = vrot.lane.b32.xlu0 %v462_v49, %s671_s0  ;;  %527 = vperm.xlu2 %605, %v462_v49   ;;  %v494_v51 = vmul.f32 %v493_v50, %v462_v49 }
 0x2b4   :  { %514 = vrot.lane.b32.xlu0 %v512_v52, %s672_s11  ;;  %608 = vset.pattern.permute.xlu2 %v664_v0 }
 0x2bc   :  { %534 = vperm.xlu0 %606, %v472_v43  }
 0x306   :  { %v528_v8 = vpop.permute.xlu2 %527 }
 0x307   :  { %v530_v12 = vperm.slane %v528_v8, 0 }
 0x312   :  { %v497_v16 = vpop.permute.xlu1 %496 }
 0x313   :  { %v499_v21 = vmul.f32 %v497_v16, %v494_v51 }
 0x315   :  { %501 = vrot.lane.b32.xlu1 %v499_v21, %s671_s0 }
 0x31d   :  { %521 = vperm.xlu1 %604, %v445_v17  }
 0x31e   :  { %v481_v56 = vpop.permute.xlu0 %480 }
 0x31f   :  { %v483_v1 = vmul.f32 %v481_v56, %v478_v54  ;;  %v492_v57 = vmul.f32 %v491_v55, %v481_v56 }
 0x321   :  { %v487_v59 = vsub.f32 %v483_v1, %v486_v25 }
 0x323   :  { %v489_v60 = vsub.f32 %v487_v59, %v488_v58 }
 0x325   :  { %607 = vset.pattern.permute.xlu1 %v664_v0 }
 0x326   :  { %542 = vperm.xlu1 %607, %v489_v60   ;;  %v515_v3 = vpop.permute.xlu0 %514 }
 0x32e   :  { %v535_v13 = vpop.permute.xlu0 %534 }
 0x32f   :  { %v537_v17 = vperm.slane %v535_v13, 0 }
 0x387   :  { %v502_v61 = vpop.permute.xlu1 %501 }
 0x388   :  { %v504_v62 = vsub.f32 %v492_v57, %v502_v61  ;;  %v511_v63 = vadd.f32 %v502_v61, %v486_v25 }
 0x38a   :  { %v510_v5 = vsub.f32 %v504_v62, %v508_v2  ;;  %v517_v4 = vsub.f32 %v511_v63, %v515_v3 }
 0x38c   :  { %550 = vperm.xlu2 %608, %v510_v5   ;;  %558 = vperm.xlu1 %607, %v517_v4  }
 0x38f   :  { %v522_v6 = vpop.permute.xlu1 %521 }
 0x390   :  { %v524_v20 = vperm.slane %v522_v6, 0 }
 0x392   :  { %v531_v14 = vsel %vm525_vm9, %v530_v12, %v524_v20 }
 0x393   :  { %v538_v19 = vsel %vm532_vm10, %v537_v17, %v531_v14 }
 0x398   :  { %v543_v10 = vpop.permute.xlu1 %542 }
 0x399   :  { %v545_v15 = vperm.slane %v543_v10, 0 }
 0x39b   :  { %v546_v26 = vsel %vm539_vm11, %v545_v15, %v538_v19 }
 0x3e6   :  { %v551_v0 = vpop.permute.xlu2 %550 }
 0x3e7   :  { %v553_v18 = vperm.slane %v551_v0, 0 }
 0x3e9   :  { %v554_v28 = vsel %vm547_vm12, %v553_v18, %v546_v26 }
 0x3fe   :  { %v559_v23 = vpop.permute.xlu1 %558 }
 0x3ff   :  { %v561_v27 = vperm.slane %v559_v23, 0 }
 0x401   :  { %v562_v30 = vsel %vm555_vm13, %v561_v27, %v554_v28 }
 0x402   :  { %564 = vst.msk [vmem:[#allocation5] sm:$0x1] %vm563_vm14, %v562_v30 }
 0x403   :  { %575 = dma.vmem_to_hbm [thread:$0]  %s571_s17, 16, %s573_s20, [#allocation4]  }
 0x404   :  { %661 = dma.done.wait [#allocation4], 16  }
 0x405   :  { %662 = vsyncadd [#allocation4], 4294967280 }
 0x406   :  { %580 = vsyncpa [#allocation3], 1 }
 0x407   :  { %581 = vsyncpa [#allocation4], 1 }

</bundles_post_ra>
